<compile_context>
chip_gen: v6e
topology: v6e:2x2x1
jax: 0.10.0
libtpu: 0.0.40
codegen_flags: <defaults>
</compile_context>

<pallas_src>
import functools

import jax
import jax.numpy as jnp
from jax import lax
from jax.experimental import pallas as pl
from jax.experimental.pallas import tpu as pltpu


def _mlp_value_kernel(n_layers, x_ref, *refs):
    """refs = (w0, b0, w1, b1, ..., w_{n-1}, b_{n-1}, o_ref).

    Layout:
      x_ref : [tb, D]        f32  (native batch-major input tile)
      w_i   : [out_i, in_i]  f32  (PyTorch nn.Linear layout)
      b_i   : [out_i, 1]     f32  (sublane column, broadcasts over lanes)
      o_ref : [out_dim, tb]  f32  (lane-dense output slab)
    """
    o_ref = refs[-1]

    h = x_ref[...]                                  # [tb, D] f32
    for i in range(n_layers):
        w = refs[2 * i][...]                        # [out, in] f32
        b = refs[2 * i + 1][...]                    # [out, 1]  f32
        if i == 0:
            # Contract W's feature axis with the tile's feature axis:
            # [out, in] x [tb, in] -> [out, tb]  (A @ B^T form on the MXU).
            dn = (((1,), (1,)), ((), ()))
        else:
            # Plain matmul: [out, in] x [in, tb] -> [out, tb].
            dn = (((1,), (0,)), ((), ()))
        h = lax.dot_general(w, h, dimension_numbers=dn,
                            preferred_element_type=jnp.float32) + b
        if i < n_layers - 1:
            # Hidden layers: Sigmoid.  Lowers to an EUP transcendental; the EUP
            # slot has slack in this DMA/overhead-bound regime.
            h = jax.nn.sigmoid(h)
        # Final layer: linear (no activation).
    o_ref[...] = h.astype(o_ref.dtype)


def _round_up(x, m):
    return (x + m - 1) // m * m


def _vmem_capacity_bytes():
    try:
        return int(pltpu.get_tpu_info().vmem_capacity_bytes)
    except Exception:
        return 64 * 1024 * 1024  # conservative fallback: v7x per-TC VMEM


def _choose_tile(batch, in_dim, out_dim, hidden_max, weight_bytes, vmem_budget):
    """Largest lane-aligned batch tile that fits the VMEM budget (f32)."""
    # Per-batch-column VMEM cost: double-buffered x tile + out tile, plus
    # headroom for the f32 [hidden, tb] intermediates.
    per_col = (2 * in_dim + 2 * out_dim + 4 * hidden_max) * 4
    usable = max(0, vmem_budget - 2 * weight_bytes - (2 << 20))
    tb_cap = (usable // per_col) // 128 * 128
    tb_cap = max(128, min(32768, tb_cap))

    b_lanes = _round_up(batch, 128)
    tb = min(tb_cap, b_lanes)
    # v7x: guarantee >= 2 grid steps when there is enough batch to split, so
    # dimension_semantics=("parallel",) shards across both TensorCores.
    if b_lanes // tb < 2 and b_lanes >= 256:
        tb = _round_up(pl.cdiv(b_lanes, 2), 128)
    # Single-step case: shrink the tile to exactly the batch.  block == full
    # array dims satisfies the (8,128) rule and leaves no OOB region.
    if tb >= batch:
        tb = batch
    return tb


def mlp_value_pallas(x, weights, biases):
    """x: [B, D] f32.  weights[i]: [out_i, in_i] (PyTorch layout).  biases[i]: [out_i].

    Returns [B, out_dim] f32, matching MLPValue.forward.
    """
    assert len(weights) == len(biases)
    n_layers = len(weights)
    batch, in_dim = x.shape
    out_dim = int(weights[-1].shape[0])
    hidden_max = max([in_dim] + [int(w.shape[0]) for w in weights])

    weight_bytes = sum(int(w.size) * 4 + int(b.size) * 4
                       for w, b in zip(weights, biases))
    vmem_cap = _vmem_capacity_bytes()
    # Request ~half the physical VMEM: ~32 MiB on v7x (64 MiB chip),
    # ~64 MiB on v5e/v6e (128 MiB chips; v5e's scoped default is only ~16 MiB).
    vmem_limit = int(min(vmem_cap // 2, 96 * 1024 * 1024))
    tb = _choose_tile(batch, in_dim, out_dim, hidden_max, weight_bytes, vmem_limit)
    grid = (pl.cdiv(batch, tb),)

    x = x.astype(jnp.float32)
    args = [x]
    in_specs = [pl.BlockSpec((tb, in_dim), lambda i: (i, 0))]
    for w, b in zip(weights, biases):
        wf = w.astype(jnp.float32)                     # [out, in]
        bc = b.astype(jnp.float32).reshape(-1, 1)      # [out, 1]
        args += [wf, bc]
        # Constant index maps -> weights/biases stay VMEM-resident across steps.
        in_specs += [
            pl.BlockSpec(wf.shape, lambda i: (0, 0)),
            pl.BlockSpec(bc.shape, lambda i: (0, 0)),
        ]

    flops = 2 * batch * sum(int(w.size) for w in weights)
    transcendentals = batch * sum(int(w.shape[0]) for w in weights[:-1])
    bytes_accessed = (int(x.size) + sum(int(w.size) + int(b.size)
                                        for w, b in zip(weights, biases))
                      + batch * out_dim) * 4

    # Overhanging last block: OOB reads of x feed only output columns that are
    # dropped on writeback (Pallas masks OOB writes) -- relied on consciously.
    out_t = pl.pallas_call(
        functools.partial(_mlp_value_kernel, n_layers),
        out_shape=jax.ShapeDtypeStruct((out_dim, batch), jnp.float32),
        grid=grid,
        in_specs=in_specs,
        out_specs=pl.BlockSpec((out_dim, tb), lambda i: (0, i)),
        compiler_params=pltpu.CompilerParams(
            dimension_semantics=("parallel",),
            vmem_limit_bytes=vmem_limit,
        ),
        cost_estimate=pl.CostEstimate(
            flops=int(flops),
            transcendentals=int(transcendentals),
            bytes_accessed=int(bytes_accessed),
        ),
    )(*args)

    # Lane-dense [out_dim, B] -> PyTorch-facing [B, out_dim]; for out_dim=1
    # this transpose is layout metadata only.
    return out_t.T


def init_params(key, input_dim, hidden_dims, output_dim=1):
    """Deterministic init mirroring nn.Linear (uniform +/- 1/sqrt(fan_in)),
    stored in PyTorch [out_features, in_features] layout."""
    dims = [input_dim] + list(hidden_dims) + [output_dim]
    weights, biases = [], []
    for i in range(1, len(dims)):
        fan_in, fan_out = dims[i - 1], dims[i]
        key, kw, kb = jax.random.split(key, 3)
        bound = 1.0 / jnp.sqrt(jnp.float32(fan_in))
        w = jax.random.uniform(kw, (fan_out, fan_in), jnp.float32, -bound, bound)
        b = jax.random.uniform(kb, (fan_out,), jnp.float32, -bound, bound)
        weights.append(w)
        biases.append(b)
    return weights, biases


def mlp_value_ref(x, weights, biases):
    """Pure-JAX f32 reference matching the PyTorch module semantics."""
    h = x
    n = len(weights)
    for i, (w, b) in enumerate(zip(weights, biases)):
        h = h @ w.T + b
        if i < n - 1:
            h = jax.nn.sigmoid(h)
    return h


if __name__ == "__main__":
    key = jax.random.PRNGKey(0)

    input_dim = 16
    hidden_dims = [32, 32]
    output_dim = 1

    key, kp = jax.random.split(key)
    weights, biases = init_params(kp, input_dim, hidden_dims, output_dim)

    # Small batch: single grid step, tile shrinks to the exact batch (no OOB).
    batch = 8
    key, kx = jax.random.split(key)
    x = jax.random.normal(kx, (batch, input_dim), dtype=jnp.float32)
    out = jax.block_until_ready(mlp_value_pallas(x, weights, biases))
    ref = mlp_value_ref(x, weights, biases)
    assert out.shape == (batch, output_dim)
    # f32 end-to-end; tolerance covers TPU default matmul-precision differences
    # between the XLA reference dot and the MXU kernel dot.
    assert jnp.allclose(out, ref, atol=1e-2, rtol=1e-2)

    # Larger, non-aligned batch: 2 grid steps with an overhanging last block.
    batch2 = 300
    key, kx2 = jax.random.split(key)
    x2 = jax.random.normal(kx2, (batch2, input_dim), dtype=jnp.float32)
    out2 = jax.block_until_ready(mlp_value_pallas(x2, weights, biases))
    ref2 = mlp_value_ref(x2, weights, biases)
    assert out2.shape == (batch2, output_dim)
    assert jnp.allclose(out2, ref2, atol=1e-2, rtol=1e-2)

    print("KERNEL_OK")
</pallas_src>

<mosaic_0001>
module attributes {stable_mosaic.version = 11 : i64} {
  func.func @_mlp_value_kernel(%arg0: i32, %arg1: memref<8x16xf32, #tpu.memory_space<vmem>>, %arg2: memref<32x16xf32, #tpu.memory_space<vmem>>, %arg3: memref<32x1xf32, #tpu.memory_space<vmem>>, %arg4: memref<32x32xf32, #tpu.memory_space<vmem>>, %arg5: memref<32x1xf32, #tpu.memory_space<vmem>>, %arg6: memref<1x32xf32, #tpu.memory_space<vmem>>, %arg7: memref<1x1xf32, #tpu.memory_space<vmem>>, %arg8: memref<1x8xf32, #tpu.memory_space<vmem>>) attributes {dimension_semantics = [#tpu.dimension_semantics<parallel>], iteration_bounds = array<i64: 1>, scalar_prefetch = 0 : i64, scratch_operands = 0 : i64, tpu.core_type = #tpu.core_type<tc>, window_params = [{transform_indices = @transform_0, window_bounds = array<i64: 8, 16>}, {pipeline_mode = #tpu.pipeline_mode<synchronous>, transform_indices = @transform_1, window_bounds = array<i64: 32, 16>}, {pipeline_mode = #tpu.pipeline_mode<synchronous>, transform_indices = @transform_2, window_bounds = array<i64: 32, 1>}, {pipeline_mode = #tpu.pipeline_mode<synchronous>, transform_indices = @transform_3, window_bounds = array<i64: 32, 32>}, {pipeline_mode = #tpu.pipeline_mode<synchronous>, transform_indices = @transform_4, window_bounds = array<i64: 32, 1>}, {pipeline_mode = #tpu.pipeline_mode<synchronous>, transform_indices = @transform_5, window_bounds = array<i64: 1, 32>}, {pipeline_mode = #tpu.pipeline_mode<synchronous>, transform_indices = @transform_6, window_bounds = array<i64: 1, 1>}, {transform_indices = @transform_7, window_bounds = array<i64: 1, 8>}]} {
    %c0 = arith.constant 0 : index
    %c0_0 = arith.constant 0 : index
    %0 = vector.load %arg1[%c0, %c0_0] : memref<8x16xf32, #tpu.memory_space<vmem>>, vector<8x16xf32>
    %c0_1 = arith.constant 0 : index
    %c0_2 = arith.constant 0 : index
    %1 = vector.load %arg2[%c0_1, %c0_2] : memref<32x16xf32, #tpu.memory_space<vmem>>, vector<32x16xf32>
    %c0_3 = arith.constant 0 : index
    %c0_4 = arith.constant 0 : index
    %2 = vector.load %arg3[%c0_3, %c0_4] : memref<32x1xf32, #tpu.memory_space<vmem>>, vector<32x1xf32>
    %cst = arith.constant dense<0.000000e+00> : vector<32x8xf32>
    %3 = tpu.matmul %1, %0, %cst {dimension_numbers = #tpu.dot_dimension_numbers<[1], [1], [0], [0], [0, 0, 1, 0], [], []>} : vector<32x16xf32>, vector<8x16xf32>, vector<32x8xf32> -> vector<32x8xf32>
    %4 = vector.broadcast %2 : vector<32x1xf32> to vector<32x8xf32>
    %5 = arith.addf %3, %4 : vector<32x8xf32>
    %6 = arith.negf %5 : vector<32x8xf32>
    %7 = math.exp %6 : vector<32x8xf32>
    %cst_5 = arith.constant 1.000000e+00 : f32
    %8 = vector.broadcast %cst_5 : f32 to vector<32x8xf32>
    %9 = arith.addf %8, %7 : vector<32x8xf32>
    %10 = arith.divf %8, %9 : vector<32x8xf32>
    %c0_6 = arith.constant 0 : index
    %c0_7 = arith.constant 0 : index
    %11 = vector.load %arg4[%c0_6, %c0_7] : memref<32x32xf32, #tpu.memory_space<vmem>>, vector<32x32xf32>
    %c0_8 = arith.constant 0 : index
    %c0_9 = arith.constant 0 : index
    %12 = vector.load %arg5[%c0_8, %c0_9] : memref<32x1xf32, #tpu.memory_space<vmem>>, vector<32x1xf32>
    %cst_10 = arith.constant dense<0.000000e+00> : vector<32x8xf32>
    %13 = tpu.matmul %11, %10, %cst_10 {dimension_numbers = #tpu.dot_dimension_numbers<[1], [0], [0], [1], [0, 0, 1, 1], [], []>} : vector<32x32xf32>, vector<32x8xf32>, vector<32x8xf32> -> vector<32x8xf32>
    %14 = vector.broadcast %12 : vector<32x1xf32> to vector<32x8xf32>
    %15 = arith.addf %13, %14 : vector<32x8xf32>
    %16 = arith.negf %15 : vector<32x8xf32>
    %17 = math.exp %16 : vector<32x8xf32>
    %cst_11 = arith.constant 1.000000e+00 : f32
    %18 = vector.broadcast %cst_11 : f32 to vector<32x8xf32>
    %19 = arith.addf %18, %17 : vector<32x8xf32>
    %20 = arith.divf %18, %19 : vector<32x8xf32>
    %c0_12 = arith.constant 0 : index
    %c0_13 = arith.constant 0 : index
    %21 = vector.load %arg6[%c0_12, %c0_13] : memref<1x32xf32, #tpu.memory_space<vmem>>, vector<1x32xf32>
    %c0_14 = arith.constant 0 : index
    %c0_15 = arith.constant 0 : index
    %22 = vector.load %arg7[%c0_14, %c0_15] : memref<1x1xf32, #tpu.memory_space<vmem>>, vector<1x1xf32>
    %cst_16 = arith.constant dense<0.000000e+00> : vector<1x8xf32>
    %23 = tpu.matmul %21, %20, %cst_16 {dimension_numbers = #tpu.dot_dimension_numbers<[1], [0], [0], [1], [0, 0, 1, 1], [], []>} : vector<1x32xf32>, vector<32x8xf32>, vector<1x8xf32> -> vector<1x8xf32>
    %24 = vector.broadcast %22 : vector<1x1xf32> to vector<1x8xf32>
    %25 = arith.addf %23, %24 : vector<1x8xf32>
    %c0_17 = arith.constant 0 : index
    %c0_18 = arith.constant 0 : index
    %26 = vector.load %arg8[%c0_17, %c0_18] : memref<1x8xf32, #tpu.memory_space<vmem>>, vector<1x8xf32>
    tpu.vector_store %arg8[%c0_17, %c0_18], %25 {strides = array<i32>} : memref<1x8xf32, #tpu.memory_space<vmem>>, vector<1x8xf32>,
    return
  }
  func.func @transform_0(%arg0: i32) -> (i32, i32) {
    %c0_i32 = arith.constant 0 : i32
    %c0_i32_0 = arith.constant 0 : i32
    return %arg0, %c0_i32 : i32, i32
  }
  func.func @transform_1(%arg0: i32) -> (i32, i32) {
    %c0_i32 = arith.constant 0 : i32
    %c0_i32_0 = arith.constant 0 : i32
    %c0_i32_1 = arith.constant 0 : i32
    return %c0_i32, %c0_i32_0 : i32, i32
  }
  func.func @transform_2(%arg0: i32) -> (i32, i32) {
    %c0_i32 = arith.constant 0 : i32
    %c0_i32_0 = arith.constant 0 : i32
    %c0_i32_1 = arith.constant 0 : i32
    return %c0_i32, %c0_i32_0 : i32, i32
  }
  func.func @transform_3(%arg0: i32) -> (i32, i32) {
    %c0_i32 = arith.constant 0 : i32
    %c0_i32_0 = arith.constant 0 : i32
    %c0_i32_1 = arith.constant 0 : i32
    return %c0_i32, %c0_i32_0 : i32, i32
  }
  func.func @transform_4(%arg0: i32) -> (i32, i32) {
    %c0_i32 = arith.constant 0 : i32
    %c0_i32_0 = arith.constant 0 : i32
    %c0_i32_1 = arith.constant 0 : i32
    return %c0_i32, %c0_i32_0 : i32, i32
  }
  func.func @transform_5(%arg0: i32) -> (i32, i32) {
    %c0_i32 = arith.constant 0 : i32
    %c0_i32_0 = arith.constant 0 : i32
    %c0_i32_1 = arith.constant 0 : i32
    return %c0_i32, %c0_i32_0 : i32, i32
  }
  func.func @transform_6(%arg0: i32) -> (i32, i32) {
    %c0_i32 = arith.constant 0 : i32
    %c0_i32_0 = arith.constant 0 : i32
    %c0_i32_1 = arith.constant 0 : i32
    return %c0_i32, %c0_i32_0 : i32, i32
  }
  func.func @transform_7(%arg0: i32) -> (i32, i32) {
    %c0_i32 = arith.constant 0 : i32
    %c0_i32_0 = arith.constant 0 : i32
    return %c0_i32, %arg0 : i32, i32
  }
}

</mosaic_0001>

<bundles_post_ra>
// kernel: tpu_custom_call.1
= control target key start
LH: loop header
LB: loop body
LE: loop exit
PB: predicated region body
PF: predicated region fallthrough
CT: control target
= control target key end

     0   :  { %s677_s0 = inlined_call_operand.vmem [shape: f32[8,16], index: 0, kind: input, shape index: {}]   ;;  %s678_s1 = inlined_call_operand.vmem [shape: f32[32,16], index: 1, kind: input, shape index: {}]   ;;  %s679_s2 = inlined_call_operand.vmem [shape: f32[32,1], index: 2, kind: input, shape index: {}]   ;;  %s680_s3 = inlined_call_operand.vmem [shape: f32[32,32], index: 3, kind: input, shape index: {}]   ;;  %s681_s4 = inlined_call_operand.vmem [shape: f32[32,1], index: 4, kind: input, shape index: {}]   ;;  %s682_s5 = inlined_call_operand.vmem [shape: f32[1,32], index: 5, kind: input, shape index: {}]   ;;  %s683_s6 = inlined_call_operand.<no memory space> [shape: f32[1,1], index: 6, kind: input, shape index: {}]   ;;  %s684_s7 = inlined_call_operand.hbm [shape: f32[1,8], index: 7, kind: output, shape index: {}]  }
   0x1   :  { %v12_v0 = vstv %s683_s6 }
   0x2   :  { %13 = vst [vmem:[#allocation2] sm:$0x1] %v12_v0 }
   0x3   :  { %v29_v1 = vld [vmem:[%s677_s0] sm:$0xff]  ;;  %vm58_vm0 = vcmask 130048   ;;  %v37_v3 = vld [vmem:[%s679_s2 + $0x18] sm:$0xff]  ;;  %v31_v4 = vld [vmem:[%s678_s1 + $0x8] sm:$0xff]  ;;  %v562_v5 = vmov 0  }
   0x4   :  { %v30_v2 = vld [vmem:[%s678_s1] sm:$0xff]  ;;  %469 = vmatprep.subr.msk.mxu0 %vm58_vm0, %v29_v1  ;;  %506 = vset.pattern.permute.xlu0 %v562_v5  ;;  %v35_v6 = vld [vmem:[%s679_s2 + $0x8] sm:$0xff]  ;;  %v32_v7 = vld [vmem:[%s678_s1 + $0x10] sm:$0xff] }
   0x5   :  { %471 = vmatprep.mubr.msk.f32.mxu0 %vm58_vm0, %v30_v2  ;;  %470 = vmatpush3.xpose.msk.msra.mxu0 %vm58_vm0, %v29_v1  ;;  %v36_v8 = vld [vmem:[%s679_s2 + $0x10] sm:$0xff] }
   0x6   :  { %55 = vperm.xlu0 %506, %v37_v3   ;;  %507 = vset.pattern.permute.xlu1 %v562_v5 }
   0x7   :  { %45 = vperm.xlu1 %507, %v35_v6  }
   0x8   :  { %14 = vsyncpa [#allocation4], 0  ;;  %472 = vmatmul.mubr.msk.f32.vlgmr.msra.gmra.mxu0 %vm58_vm0, %v31_v4  ;;  %v34_v9 = vld [vmem:[%s679_s2] sm:$0xff]  ;;  %v33_v10 = vld [vmem:[%s678_s1 + $0x18] sm:$0xff]  ;;  %vm211_vm1 = vcmask 261120   ;;  %v563_v48 = vmov 0.0  }
   0x9   :  { %474 = vmatprep.mubr.msk.f32.mxu0 %vm58_vm0, %v32_v7  ;;  %v190_v11 = vld [vmem:[%s681_s4 + $0x18] sm:$0xff]  ;;  %v189_v12 = vld [vmem:[%s681_s4 + $0x10] sm:$0xff]  ;;  %v188_v13 = vld [vmem:[%s681_s4 + $0x8] sm:$0xff]  ;;  %491 = vmatprep.subr.mxu0 %v563_v48  ;;  %vm564_vm2 = vmmov 0   ;;  %s565_s9 = smov [#allocation3]   ;;  %vm417_vm3 = vcmask 57344  }
   0xa   :  { %50 = vperm.xlu0 %506, %v36_v8   ;;  %v187_v14 = vld [vmem:[%s681_s4] sm:$0xff]  ;;  %v184_v45 = vld [vmem:[%s680_s3 + $0x8] sm:$0xff]  ;;  %v185_v46 = vld [vmem:[%s680_s3 + $0x10] sm:$0xff]  ;;  %s425_s0 = sshll.u32 %s565_s9, 4  ;;  %s426_s0 = int_to_ptr.vmem [resolvable:$true] %s425_s0 }
   0xb   :  { %40 = vperm.xlu1 %507, %v34_v9   ;;  %v334_v15 = vld [vmem:[#allocation2] sm:$0x1]  ;;  %v186_v47 = vld [vmem:[%s680_s3 + $0x18] sm:$0xff]  ;;  %s540_s10 = scalar_lea.vmem %s426_s0, 16  ;;  %p545_p1 = scmp.lt.s32.totalorder %s426_s0, %s426_s0 }
   0xc   :  { %475 = vmatmul.mubr.msk.f32.gmra.mxu0 %vm58_vm0, %v33_v10  ;;  %v183_v16 = vld [vmem:[%s680_s3] sm:$0xff]  ;;  %p541_p0 = scmp.ne.s32.totalorder %s426_s0, %s540_s10 }
   0xd   :  { %485 = vmatprep.mubr.msk.f32.mxu1 %vm211_vm1, %v183_v16  ;;  %499 = vmatprep.mubr.msk.f32.mxu0 %vm564_vm2, %v563_v48 }
   0xe   :  { %208 = vperm.xlu0 %506, %v190_v11  }
   0xf   :  { %203 = vperm.xlu1 %507, %v189_v12   ;;  %v333_v12 = vld [vmem:[%s682_s5] sm:$0x1]  ;;  %s544_s5 = scalar_lea.vmem %s426_s0, 32 }
  0x10   :  { %p546_p2 = scmp.lt.s32.totalorder %s544_s5, %s540_s10 }
  0x12   :  { %198 = vperm.xlu0 %506, %v188_v13   ;;  %p547_p3 = por %p546_p2, %p545_p1 }
  0x13   :  { %193 = vperm.xlu1 %507, %v187_v14   ;;  %v340_v14 = vlaneseq }
  0x14   :  { %p548_p4 = pnand %p547_p3, %p541_p0 }
  0x16   :  { %337 = vperm.xlu0 %506, %v334_v15   ;;  %v341_v15 = vshrl.u32 %v340_v14, 7 }
  0x18   :  { %v342_v16 = vsub.s32 0, %v341_v15 }
  0x81   :  { %v56_v18 = vpop.permute.xlu0 %55 }
  0x82   :  { %v46_v17 = vpop.permute.xlu1 %45 }
  0x85   :  { %v51_v27 = vpop.permute.xlu0 %50 }
  0x86   :  { %v41_v21 = vpop.permute.xlu1 %40 }
  0x89   :  { %v209_v49 = vpop.permute.xlu0 %208 }
  0x8a   :  { %v204_v50 = vpop.permute.xlu1 %203 }
  0x8d   :  { %v199_v51 = vpop.permute.xlu0 %198 }
  0x8e   :  { %v194_v54 = vpop.permute.xlu1 %193 }
  0xc8   :  { %v473_v19 = vpop.f32.mrf.mxu0 }
  0xc9   :  { %v146_v20 = vadd.f32 %v473_v19, %v46_v17  ;;  %v338_v17 = vpop.permute.xlu0 %337 }
  0xca   :  { %v140_v22 = vpop.f32.mrf.mxu0 }
  0xcb   :  { %v141_v23 = vadd.f32 %v140_v22, %v41_v21  ;;  %v439_v24 = vmul.f32 -1.442695, %v146_v20 }
  0xcc   :  { %v476_v25 = vpop.f32.mrf.mxu0 }
  0xcd   :  { %v156_v26 = vadd.f32 %v476_v25, %v56_v18  ;;  %v438_v28 = vmul.f32 -1.442695, %v141_v23  ;;  %508 = vpow2.f32 %v439_v24  ;;  %v343_v18 = vrot.slane %v338_v17, %v342_v16 }
  0xce   :  { %v150_v29 = vpop.f32.mrf.mxu0 }
  0xcf   :  { %v441_v30 = vmul.f32 -1.442695, %v156_v26  ;;  %v151_v31 = vadd.f32 %v150_v29, %v51_v27 }
  0xd1   :  { %510 = vpow2.f32 %v441_v30  ;;  %v440_v32 = vmul.f32 -1.442695, %v151_v31 }
  0xd2   :  { %512 = vpow2.f32 %v438_v28 }
  0xd3   :  { %514 = vpow2.f32 %v440_v32 }
  0xda   :  { %v509_v33 = vpop.eup %508 }
  0xdb   :  { %v172_v38 = vadd.f32 1.0, %v509_v33 }
  0xde   :  { %v511_v34 = vpop.eup %510 }
  0xdf   :  { %v513_v35 = vpop.eup %512  ;;  %v174_v36 = vadd.f32 1.0, %v511_v34 }
  0xe0   :  { %v515_v37 = vpop.eup %514  ;;  %v171_v40 = vadd.f32 1.0, %v513_v35 }
  0xe1   :  { %516 = vrcp.f32 %v174_v36  ;;  %v173_v39 = vadd.f32 1.0, %v515_v37 }
  0xe3   :  { %518 = vrcp.f32 %v173_v39 }
  0xe4   :  { %520 = vrcp.f32 %v172_v38 }
  0xe5   :  { %522 = vrcp.f32 %v171_v40 }
  0xee   :  { %v517_v41 = vpop.eup %516 }
  0xef   :  { %477 = vmatprep.subr.mxu1 %v517_v41 }
  0xf0   :  { %v519_v42 = vpop.eup %518  ;;  %478 = vmatpush3.msra.mxu1 %v517_v41 }
  0xf1   :  { %479 = vmatprep.subr.mxu1 %v519_v42  ;;  %v521_v43 = vpop.eup %520 }
  0xf2   :  { %480 = vmatpush3.msra.mxu1 %v519_v42  ;;  %v523_v44 = vpop.eup %522 }
  0xf3   :  { %481 = vmatprep.subr.mxu1 %v521_v43 }
  0xf4   :  { %482 = vmatpush3.msra.mxu1 %v521_v43 }
  0xf5   :  { %483 = vmatprep.subr.mxu1 %v523_v44 }
  0xf6   :  { %484 = vmatpush3.msra.mxu1 %v523_v44 }
  0xf7   :  { %486 = vmatmul.mubr.msk.f32.vlgmr.msra.gmra.mxu1 %vm211_vm1, %v184_v45 }
  0xf8   :  { %488 = vmatprep.mubr.msk.f32.mxu1 %vm211_vm1, %v185_v46 }
  0xfb   :  { %489 = vmatmul.mubr.msk.f32.gmra.mxu1 %vm211_vm1, %v186_v47 }
 0x1b7   :  { %v487_v52 = vpop.f32.mrf.mxu1 }
 0x1b8   :  { %v296_v53 = vadd.f32 %v487_v52, %v199_v51 }
 0x1b9   :  { %v290_v55 = vpop.f32.mrf.mxu1 }
 0x1ba   :  { %v291_v56 = vadd.f32 %v290_v55, %v194_v54  ;;  %v447_v57 = vmul.f32 -1.442695, %v296_v53 }
 0x1bb   :  { %v490_v58 = vpop.f32.mrf.mxu1 }
 0x1bc   :  { %v306_v59 = vadd.f32 %v490_v58, %v209_v49  ;;  %v446_v60 = vmul.f32 -1.442695, %v291_v56  ;;  %524 = vpow2.f32 %v447_v57 }
 0x1bd   :  { %v300_v61 = vpop.f32.mrf.mxu1 }
 0x1be   :  { %v449_v62 = vmul.f32 -1.442695, %v306_v59  ;;  %v301_v63 = vadd.f32 %v300_v61, %v204_v50 }
 0x1c0   :  { %526 = vpow2.f32 %v449_v62  ;;  %v448_v0 = vmul.f32 -1.442695, %v301_v63 }
 0x1c1   :  { %528 = vpow2.f32 %v446_v60 }
 0x1c2   :  { %530 = vpow2.f32 %v448_v0 }
 0x1c9   :  { %v525_v1 = vpop.eup %524 }
 0x1ca   :  { %v322_v6 = vadd.f32 1.0, %v525_v1 }
 0x1cd   :  { %v527_v2 = vpop.eup %526 }
 0x1ce   :  { %v529_v3 = vpop.eup %528  ;;  %v324_v4 = vadd.f32 1.0, %v527_v2 }
 0x1cf   :  { %v531_v5 = vpop.eup %530  ;;  %v321_v8 = vadd.f32 1.0, %v529_v3 }
 0x1d0   :  { %532 = vrcp.f32 %v324_v4  ;;  %v323_v7 = vadd.f32 1.0, %v531_v5 }
 0x1d2   :  { %534 = vrcp.f32 %v323_v7 }
 0x1d3   :  { %536 = vrcp.f32 %v322_v6 }
 0x1d4   :  { %538 = vrcp.f32 %v321_v8 }
 0x1dd   :  { %v533_v9 = vpop.eup %532 }
 0x1de   :  { %492 = vmatpush3.msra.mxu0 %v533_v9 }
 0x1df   :  { %v535_v10 = vpop.eup %534  ;;  %493 = vmatprep.subr.mxu0 %v563_v48 }
 0x1e0   :  { %494 = vmatpush3.msra.mxu0 %v535_v10  ;;  %v537_v11 = vpop.eup %536 }
 0x1e1   :  { %495 = vmatprep.subr.mxu0 %v563_v48  ;;  %v539_v13 = vpop.eup %538 }
 0x1e2   :  { %496 = vmatpush3.msra.mxu0 %v537_v11 }
 0x1e3   :  { %497 = vmatprep.subr.mxu0 %v563_v48 }
 0x1e4   :  { %498 = vmatpush3.msra.mxu0 %v539_v13 }
 0x1e5   :  { %500 = vmatmul.mubr.msk.f32.vlgmr.msra.gmra.mxu0 %vm211_vm1, %v333_v12 }
 0x2a5   :  { %v413_v19 = vpop.f32.mrf.mxu0 }
 0x2a6   :  { %v414_v20 = vadd.f32 %v413_v19, %v343_v18 }
 0x2a7   :  { %v501_v21 = vpop.f32.mrf.mxu0 }
 0x2a8   :  { %418 = vst.msk [vmem:[#allocation3] sm:$0x1] %vm417_vm3, %v414_v20 }
 0x2a9   :  { %551 = shalt.err (!%p548_p4)
}
 0x2aa   :  { %428 = dma.vmem_to_hbm [thread:$0]  %s426_s0, 16, %s684_s7, [#allocation4]  }
 0x2ab   :  { %560 = dma.done.wait [#allocation4], 16  }
 0x2ac   :  { %561 = vsyncadd [#allocation4], 4294967280 }
 0x2ad   :  { %432 = vsyncpa [#allocation4], 1 }

</bundles_post_ra>
